<compile_context>
chip_gen: v7x
topology: tpu7x:2x2x1
jax: 0.10.0
libtpu: 0.0.40
codegen_flags: <defaults>
</compile_context>

<pallas_src>
import jax
import jax.numpy as jnp
from jax import lax
from jax.experimental import pallas as pl
from jax.experimental.pallas import tpu as pltpu


def _round_up(n: int, m: int) -> int:
    return ((n + m - 1) // m) * m


# ----------------------------------------------------------------------------
# Kernel: fully lane-dense (batch on the 128-lane axis end-to-end).
# ----------------------------------------------------------------------------
def _langevin_mlp_kernel(x_ref, w1t_ref, b1_ref, w3t_ref, b3_ref, ot_ref):
    # layer 1, batch-on-lanes:  h^T[u, b] = sum_k W1^T[u, k] * x[b, k]
    # last-dim/last-dim contraction -> no transpose op, result [no_units, tile_b].
    h_t = lax.dot_general(
        w1t_ref[...], x_ref[...],
        dimension_numbers=(((1,), (1,)), ((), ())),
        preferred_element_type=jnp.float32,
    )
    # bias + ReLU in the lane-dense layout (b1 is [no_units, 1], broadcast on lanes)
    h_t = jnp.maximum(h_t + b1_ref[...], 0.0)

    # layer 3:  out^T[d, b] = sum_u W3^T[d, u] * h^T[u, b]   -> [output_dim, tile_b]
    o_t = lax.dot_general(
        w3t_ref[...], h_t.astype(w3t_ref.dtype),
        dimension_numbers=(((1,), (0,)), ((), ())),
        preferred_element_type=jnp.float32,
    )
    ot_ref[...] = (o_t + b3_ref[...]).astype(ot_ref.dtype)


# ----------------------------------------------------------------------------
# Generation-aware tiling / VMEM budget.
# ----------------------------------------------------------------------------
def _vmem_budget():
    """Return (tile_cap, vmem_limit_bytes) based on the chip's VMEM capacity."""
    try:
        cap = pltpu.get_tpu_info().vmem_capacity_bytes
    except Exception:  # conservative default if the query is unavailable
        cap = 64 * 1024 * 1024
    if cap <= 64 * 1024 * 1024:
        # v7x: 64 MiB per TensorCore -> smaller tiles, keep ~25% slack.
        return 65536, 48 * 1024 * 1024
    # v5e / v6e: 128 MiB per TensorCore.
    return 131072, 96 * 1024 * 1024


def _choose_tiling(batch: int, tile_cap: int):
    """Pick (tile_b, num_tiles): big balanced tiles, >=2 tiles for large batches."""
    if batch <= 256:
        # Single tile; block dims equal the full array dims (no alignment needed).
        return batch, 1
    # At least 2 tiles so the "parallel" batch axis shards across both v7x
    # TensorCores (harmless elsewhere); each tile is a multiple of 128 so the
    # output block's lane dim is unmasked and the x block's sublane dim aligns.
    num_tiles = max(2, -(-batch // tile_cap))
    tile_b = _round_up(-(-batch // num_tiles), 128)
    num_tiles = -(-batch // tile_b)
    return tile_b, num_tiles


# ----------------------------------------------------------------------------
# Wrapper.
# ----------------------------------------------------------------------------
def langevin_model_forward(x, w1, b1, w3, b3, *, input_dim,
                           max_tile_b=None, dim_major_output=False):
    """Fused Langevin_Model forward.

    x: any shape whose total size is a multiple of input_dim.
    Returns [batch, output_dim] f32 (PyTorch layout), or [output_dim, batch]
    if dim_major_output=True (kernel-native layout, skips one HBM pass).
    """
    x2d = x.reshape(-1, input_dim)
    batch = x2d.shape[0]
    no_units = w1.shape[1]
    output_dim = w3.shape[1]

    # ---- dtypes: run matmuls in x's native dtype (bf16 only if x is already
    # bf16 in HBM -- never cast x in the wrapper, that's a full HBM pass).
    mm_dtype = jnp.bfloat16 if x2d.dtype == jnp.bfloat16 else jnp.float32
    if x2d.dtype != mm_dtype:
        x2d = x2d.astype(mm_dtype)  # only hit for non-f32/non-bf16 inputs

    w1t = w1.T.astype(mm_dtype)                       # [no_units, input_dim] (tiny)
    w3t = w3.T.astype(mm_dtype)                       # [output_dim, no_units] (tiny)
    b1_2d = b1.reshape(no_units, 1).astype(jnp.float32)
    b3_2d = b3.reshape(output_dim, 1).astype(jnp.float32)

    # ---- tiling (generation-aware) -----------------------------------------
    tile_cap, vmem_limit = _vmem_budget()
    if max_tile_b is not None:
        tile_cap = min(tile_cap, max(128, _round_up(max_tile_b, 128)))
    tile_b, num_tiles = _choose_tiling(batch, tile_cap)
    grid = (num_tiles,)

    # ---- advisory cost estimate for the XLA scheduler ----------------------
    bytes_accessed = (
        batch * input_dim * x2d.dtype.itemsize
        + batch * output_dim * 4
        + w1t.size * w1t.dtype.itemsize
        + w3t.size * w3t.dtype.itemsize
        + (b1_2d.size + b3_2d.size) * 4
    )
    cost = pl.CostEstimate(
        flops=2 * batch * (input_dim * no_units + no_units * output_dim),
        transcendentals=0,
        bytes_accessed=bytes_accessed,
    )

    out_t = pl.pallas_call(
        _langevin_mlp_kernel,
        out_shape=jax.ShapeDtypeStruct((output_dim, batch), jnp.float32),
        grid=grid,
        in_specs=[
            # streamed, batch-tiled input (ragged last tile handled by Pallas:
            # OOB reads feed only OOB output columns, whose writes are dropped)
            pl.BlockSpec((tile_b, input_dim), lambda i: (i, 0)),
            # VMEM-resident parameters (block index constant across the grid)
            pl.BlockSpec((no_units, input_dim), lambda i: (0, 0)),
            pl.BlockSpec((no_units, 1), lambda i: (0, 0)),
            pl.BlockSpec((output_dim, no_units), lambda i: (0, 0)),
            pl.BlockSpec((output_dim, 1), lambda i: (0, 0)),
        ],
        # lane-dense transposed output: batch on the 128-lane axis
        out_specs=pl.BlockSpec((output_dim, tile_b), lambda i: (0, i)),
        compiler_params=pltpu.CompilerParams(
            dimension_semantics=("parallel",),   # megacore sharding on v7x
            vmem_limit_bytes=vmem_limit,
        ),
        cost_estimate=cost,
    )(x2d, w1t, b1_2d, w3t, b3_2d)

    if dim_major_output:
        return out_t                      # [output_dim, batch], no extra HBM pass
    return out_t.T                        # PyTorch layout [batch, output_dim]


# ----------------------------------------------------------------------------
# Parameter init mirroring Langevin_Layer's uniform_(-0.01, 0.01).
# ----------------------------------------------------------------------------
def init_params(key, input_dim, output_dim, no_units):
    ks = jax.random.split(key, 7)
    u = lambda k, shape: jax.random.uniform(k, shape, jnp.float32, -0.01, 0.01)
    return {
        "w1": u(ks[0], (input_dim, no_units)),
        "b1": u(ks[1], (no_units,)),
        # layer2 exists in the module but is unused in forward; kept for parity.
        "w2": u(ks[2], (no_units, no_units)),
        "b2": u(ks[3], (no_units,)),
        "w3": u(ks[4], (no_units, output_dim)),
        "b3": u(ks[5], (output_dim,)),
        "log_noise": jnp.array([0.0], jnp.float32),  # init_log_noise = 0.0 (unused in fwd)
    }


if __name__ == "__main__":
    input_dim, output_dim, no_units = 16, 4, 32

    key = jax.random.PRNGKey(0)
    kx, kp = jax.random.split(key)

    # Example input: (2, 4, 16) -> view(-1, 16) -> (8, 16)
    x = jax.random.normal(kx, (2, 4, input_dim), jnp.float32)
    p = init_params(kp, input_dim, output_dim, no_units)

    def ref_fwd(xx):
        x2 = xx.reshape(-1, input_dim).astype(jnp.float32)
        return jnp.maximum(x2 @ p["w1"] + p["b1"], 0.0) @ p["w3"] + p["b3"]

    # 1) small batch, single tile
    out = jax.block_until_ready(
        langevin_model_forward(x, p["w1"], p["b1"], p["w3"], p["b3"],
                               input_dim=input_dim))
    assert out.shape == (8, output_dim)
    assert jnp.allclose(out, ref_fwd(x), atol=1e-5, rtol=1e-5)

    # 2) larger batch not divisible by the tile: multi-step grid + ragged last
    #    tile handled without any wrapper-side padding pass
    xb = jax.random.normal(jax.random.PRNGKey(1), (1000, input_dim), jnp.float32)
    outb = jax.block_until_ready(
        langevin_model_forward(xb, p["w1"], p["b1"], p["w3"], p["b3"],
                               input_dim=input_dim, max_tile_b=256))
    assert outb.shape == (1000, output_dim)
    assert jnp.allclose(outb, ref_fwd(xb), atol=1e-4, rtol=1e-4)

    # 3) kernel-native dim-major output (skips the wrapper transpose pass)
    outd = jax.block_until_ready(
        langevin_model_forward(xb, p["w1"], p["b1"], p["w3"], p["b3"],
                               input_dim=input_dim, max_tile_b=256,
                               dim_major_output=True))
    assert outd.shape == (output_dim, 1000)
    assert jnp.allclose(outd.T, ref_fwd(xb), atol=1e-4, rtol=1e-4)

    # 4) x already bf16 in HBM -> matmuls run in bf16 (f32 accumulation/bias),
    #    no wrapper cast; looser tolerance
    xbf = xb.astype(jnp.bfloat16)
    outbf = jax.block_until_ready(
        langevin_model_forward(xbf, p["w1"], p["b1"], p["w3"], p["b3"],
                               input_dim=input_dim, max_tile_b=256))
    assert outbf.shape == (1000, output_dim)
    assert jnp.allclose(outbf, ref_fwd(xbf), atol=5e-3, rtol=5e-2)

    print("KERNEL_OK")
</pallas_src>

<mosaic_0001>
module attributes {stable_mosaic.version = 11 : i64} {
  func.func @_langevin_mlp_kernel(%arg0: i32, %arg1: memref<8x16xf32, #tpu.memory_space<vmem>>, %arg2: memref<32x16xf32, #tpu.memory_space<vmem>>, %arg3: memref<32x1xf32, #tpu.memory_space<vmem>>, %arg4: memref<4x32xf32, #tpu.memory_space<vmem>>, %arg5: memref<4x1xf32, #tpu.memory_space<vmem>>, %arg6: memref<4x8xf32, #tpu.memory_space<vmem>>) attributes {dimension_semantics = [#tpu.dimension_semantics<parallel>], iteration_bounds = array<i64: 1>, scalar_prefetch = 0 : i64, scratch_operands = 0 : i64, tpu.core_type = #tpu.core_type<tc>, window_params = [{transform_indices = @transform_0, window_bounds = array<i64: 8, 16>}, {pipeline_mode = #tpu.pipeline_mode<synchronous>, transform_indices = @transform_1, window_bounds = array<i64: 32, 16>}, {pipeline_mode = #tpu.pipeline_mode<synchronous>, transform_indices = @transform_2, window_bounds = array<i64: 32, 1>}, {pipeline_mode = #tpu.pipeline_mode<synchronous>, transform_indices = @transform_3, window_bounds = array<i64: 4, 32>}, {pipeline_mode = #tpu.pipeline_mode<synchronous>, transform_indices = @transform_4, window_bounds = array<i64: 4, 1>}, {transform_indices = @transform_5, window_bounds = array<i64: 4, 8>}]} {
    %c0 = arith.constant 0 : index
    %c0_0 = arith.constant 0 : index
    %0 = vector.load %arg2[%c0, %c0_0] : memref<32x16xf32, #tpu.memory_space<vmem>>, vector<32x16xf32>
    %c0_1 = arith.constant 0 : index
    %c0_2 = arith.constant 0 : index
    %1 = vector.load %arg1[%c0_1, %c0_2] : memref<8x16xf32, #tpu.memory_space<vmem>>, vector<8x16xf32>
    %cst = arith.constant dense<0.000000e+00> : vector<32x8xf32>
    %2 = tpu.matmul %0, %1, %cst {dimension_numbers = #tpu.dot_dimension_numbers<[1], [1], [0], [0], [0, 0, 1, 0], [], []>} : vector<32x16xf32>, vector<8x16xf32>, vector<32x8xf32> -> vector<32x8xf32>
    %c0_3 = arith.constant 0 : index
    %c0_4 = arith.constant 0 : index
    %3 = vector.load %arg3[%c0_3, %c0_4] : memref<32x1xf32, #tpu.memory_space<vmem>>, vector<32x1xf32>
    %4 = vector.broadcast %3 : vector<32x1xf32> to vector<32x8xf32>
    %5 = arith.addf %2, %4 : vector<32x8xf32>
    %cst_5 = arith.constant 0.000000e+00 : f32
    %6 = vector.broadcast %cst_5 : f32 to vector<32x8xf32>
    %7 = arith.maximumf %5, %6 : vector<32x8xf32>
    %c0_6 = arith.constant 0 : index
    %c0_7 = arith.constant 0 : index
    %8 = vector.load %arg4[%c0_6, %c0_7] : memref<4x32xf32, #tpu.memory_space<vmem>>, vector<4x32xf32>
    %cst_8 = arith.constant dense<0.000000e+00> : vector<4x8xf32>
    %9 = tpu.matmul %8, %7, %cst_8 {dimension_numbers = #tpu.dot_dimension_numbers<[1], [0], [0], [1], [0, 0, 1, 1], [], []>} : vector<4x32xf32>, vector<32x8xf32>, vector<4x8xf32> -> vector<4x8xf32>
    %c0_9 = arith.constant 0 : index
    %c0_10 = arith.constant 0 : index
    %10 = vector.load %arg5[%c0_9, %c0_10] : memref<4x1xf32, #tpu.memory_space<vmem>>, vector<4x1xf32>
    %11 = vector.broadcast %10 : vector<4x1xf32> to vector<4x8xf32>
    %12 = arith.addf %9, %11 : vector<4x8xf32>
    %c0_11 = arith.constant 0 : index
    %c0_12 = arith.constant 0 : index
    %13 = vector.load %arg6[%c0_11, %c0_12] : memref<4x8xf32, #tpu.memory_space<vmem>>, vector<4x8xf32>
    tpu.vector_store %arg6[%c0_11, %c0_12], %12 {strides = array<i32>} : memref<4x8xf32, #tpu.memory_space<vmem>>, vector<4x8xf32>,
    return
  }
  func.func @transform_0(%arg0: i32) -> (i32, i32) {
    %c0_i32 = arith.constant 0 : i32
    %c0_i32_0 = arith.constant 0 : i32
    return %arg0, %c0_i32 : i32, i32
  }
  func.func @transform_1(%arg0: i32) -> (i32, i32) {
    %c0_i32 = arith.constant 0 : i32
    %c0_i32_0 = arith.constant 0 : i32
    %c0_i32_1 = arith.constant 0 : i32
    return %c0_i32, %c0_i32_0 : i32, i32
  }
  func.func @transform_2(%arg0: i32) -> (i32, i32) {
    %c0_i32 = arith.constant 0 : i32
    %c0_i32_0 = arith.constant 0 : i32
    %c0_i32_1 = arith.constant 0 : i32
    return %c0_i32, %c0_i32_0 : i32, i32
  }
  func.func @transform_3(%arg0: i32) -> (i32, i32) {
    %c0_i32 = arith.constant 0 : i32
    %c0_i32_0 = arith.constant 0 : i32
    %c0_i32_1 = arith.constant 0 : i32
    return %c0_i32, %c0_i32_0 : i32, i32
  }
  func.func @transform_4(%arg0: i32) -> (i32, i32) {
    %c0_i32 = arith.constant 0 : i32
    %c0_i32_0 = arith.constant 0 : i32
    %c0_i32_1 = arith.constant 0 : i32
    return %c0_i32, %c0_i32_0 : i32, i32
  }
  func.func @transform_5(%arg0: i32) -> (i32, i32) {
    %c0_i32 = arith.constant 0 : i32
    %c0_i32_0 = arith.constant 0 : i32
    return %c0_i32, %arg0 : i32, i32
  }
}

</mosaic_0001>

<bundles_post_ra>
// kernel: tpu_custom_call.1
= control target key start
LH: loop header
LB: loop body
LE: loop exit
PB: predicated region body
PF: predicated region fallthrough
CT: control target
= control target key end

     0   :  { %vm50_vm0 = vcmask 130048   ;;  %v324_v4 = vmov 0   ;;  %s410_s0 = inlined_call_operand.vmem [shape: f32[8,16], index: 0, kind: input, shape index: {}]   ;;  %s411_s1 = inlined_call_operand.vmem [shape: f32[32,16], index: 1, kind: input, shape index: {}]   ;;  %s412_s2 = inlined_call_operand.vmem [shape: f32[32,1], index: 2, kind: input, shape index: {}]   ;;  %s413_s3 = inlined_call_operand.vmem [shape: f32[4,32], index: 3, kind: input, shape index: {}]   ;;  %s414_s4 = inlined_call_operand.vmem [shape: f32[4,1], index: 4, kind: input, shape index: {}]   ;;  %s415_s5 = inlined_call_operand.hbm [shape: f32[4,8], index: 5, kind: output, shape index: {}]  }
   0x1   :  { %v25_v0 = vld [vmem:[%s410_s0] sm:$0xff]  ;;  %v22_v3 = vld [vmem:[%s411_s1 + $0x8] sm:$0xff]  ;;  %298 = vset.pattern.permute.xlu0 %v324_v4  ;;  %v28_v5 = vld [vmem:[%s412_s2 + $0x10] sm:$0xff]  ;;  %299 = vset.pattern.permute.xlu1 %v324_v4 }
   0x2   :  { %v21_v1 = vld [vmem:[%s411_s1] sm:$0xff]  ;;  %268 = vmatprep.subr.msk.mxu0 %vm50_vm0, %v25_v0  ;;  %v23_v6 = vld [vmem:[%s411_s1 + $0x10] sm:$0xff] }
   0x3   :  { %270 = vmatprep.mubr.msk.f32.mxu0 %vm50_vm0, %v21_v1  ;;  %v26_v2 = vld [vmem:[%s412_s2] sm:$0xff]  ;;  %269 = vmatpush3.xpose.msk.msra.mxu0 %vm50_vm0, %v25_v0 }
   0x4   :  { %32 = vperm.xlu0 %298, %v26_v2  }
   0x5   :  { %10 = vsyncpa [#allocation3], 0  ;;  %v27_v7 = vld [vmem:[%s412_s2 + $0x8] sm:$0xff]  ;;  %42 = vperm.xlu1 %299, %v28_v5   ;;  %v29_v8 = vld [vmem:[%s412_s2 + $0x18] sm:$0xff]  ;;  %v325_v11 = vmov 0.0|0.0   ;;  %vm326_vm1 = vmmov 0  }
   0x6   :  { %271 = vmatmul.mubr.msk.f32.vlgmr.msra.gmra.mrb[0].mxu0 %vm50_vm0, %v22_v3  ;;  %v24_v9 = vld [vmem:[%s411_s1 + $0x18] sm:$0xff]  ;;  %v156_v10 = vld [vmem:[%s414_s4] sm:$0xf]  ;;  %287 = vmatprep.subr.bf16.mxu1 %v325_v11  ;;  %v327_v12 = vmov 0.0   ;;  %vm162_vm2 = vcmask 261120   ;;  %s328_s4 = smov [#allocation2]  }
   0x7   :  { %273 = vmatprep.mubr.msk.f32.mxu0 %vm50_vm0, %v23_v6  ;;  %284 = vmatprep.mubr.msk.f32.mxu1 %vm326_vm1, %v327_v12  ;;  %v155_v31 = vld [vmem:[%s413_s3] sm:$0xf]  ;;  %s244_s12 = sshll.u32 %s328_s4, 4  ;;  %vm236_vm3 = vcmask 60416   ;;  %s245_s12 = int_to_ptr.vmem [resolvable:$true] %s244_s12 }
   0x8   :  { %37 = vperm.xlu0 %298, %v27_v7   ;;  %s300_s13 = scalar_lea.vmem %s245_s12, 64  ;;  %p305_p1 = scmp.lt.s32.totalorder %s245_s12, %s245_s12 }
   0x9   :  { %47 = vperm.xlu1 %299, %v29_v8   ;;  %p301_p0 = scmp.ne.s32.totalorder %s245_s12, %s300_s13  ;;  %p306_p2 = scmp.lt.s32.totalorder %s300_s13, %s300_s13 }
   0xa   :  { %274 = vmatmul.mubr.msk.f32.gmra.mrb[2].mxu0 %vm50_vm0, %v24_v9 }
   0xb   :  { %p307_p3 = por %p306_p2, %p305_p1 }
   0xc   :  { %159 = vperm.xlu0 %298, %v156_v10  }
   0xd   :  { %p308_p4 = pnand %p307_p3, %p301_p0 }
  0x83   :  { %v33_v13 = vpop.permute.xlu0 %32 }
  0x84   :  { %v43_v14 = vpop.permute.xlu1 %42 }
  0x87   :  { %v38_v15 = vpop.permute.xlu0 %37 }
  0x88   :  { %v48_v21 = vpop.permute.xlu1 %47 }
  0x8b   :  { %v160_v32 = vpop.permute.xlu0 %159 }
  0xd9   :  { %v272_v16 = vpop.f32.mrb[0].mxu0 }
  0xda   :  { %v138_v17 = vadd.f32 %v272_v16, %v38_v15  ;;  %v132_v18 = vpop.f32.mrb[1].mxu0 }
  0xdb   :  { %v133_v19 = vadd.f32 %v132_v18, %v33_v13 }
  0xdc   :  { %v152_v20 = vmax.f32 %v138_v17, 0.0 }
  0xdd   :  { %v151_v22 = vmax.f32 %v133_v19, 0.0  ;;  %v275_v23 = vpop.f32.mrb[2].mxu0 }
  0xde   :  { %v148_v24 = vadd.f32 %v275_v23, %v48_v21  ;;  %v142_v25 = vpop.f32.mrb[3].mxu0 }
  0xdf   :  { %v143_v26 = vadd.f32 %v142_v25, %v43_v14  ;;  %v288_v27 = vpack.c.bf16 %v152_v20, %v151_v22 }
  0xe0   :  { %v154_v28 = vmax.f32 %v148_v24, 0.0 }
  0xe1   :  { %v153_v29 = vmax.f32 %v143_v26, 0.0  ;;  %289 = vmatpush3.bf16.msra.mxu1 %v288_v27 }
  0xe2   :  { %290 = vmatprep.subr.bf16.mxu1 %v325_v11 }
  0xe3   :  { %v291_v30 = vpack.c.bf16 %v154_v28, %v153_v29 }
  0xe5   :  { %292 = vmatpush3.bf16.msra.mxu1 %v291_v30 }
  0xe8   :  { %285 = vmatmul.mubr.msk.f32.vlgmr.msra.gmra.mrb[0].mxu1 %vm162_vm2, %v155_v31 }
 0x1bb   :  { %v232_v33 = vpop.f32.mrb[0].mxu1 }
 0x1bc   :  { %v233_v34 = vadd.f32 %v232_v33, %v160_v32  ;;  %v286_v35 = vpop.f32.mrb[1].mxu1 }
 0x1be   :  { %237 = vst.msk [vmem:[#allocation2] sm:$0xf] %vm236_vm3, %v233_v34 }
 0x1bf   :  { %311 = shalt.err (!%p308_p4)
}
 0x1c0   :  { %s312_s15 = scalar_lea.hbm %s415_s5, 64 }
 0x1c1   :  { %p313_p5 = scmp.ne.s32.totalorder %s415_s5, %s312_s15  ;;  %p316_p6 = scmp.lt.u32.totalorder %s312_s15, %s415_s5 }
 0x1c3   :  { %p318_p7 = pnand %p316_p6, %p313_p5 }
 0x1c5   :  { %321 = shalt.err (!%p318_p7)
}
 0x1c6   :  { %247 = dma.vmem_to_hbm [thread:$0]  %s245_s12, 64, %s415_s5, [#allocation3]  }
 0x1c7   :  { %322 = dma.done.wait [#allocation3], 64  }
 0x1c8   :  { %323 = vsyncadd [#allocation3], 4294967232 }
 0x1c9   :  { %251 = vsyncpa [#allocation3], 1 }

</bundles_post_ra>
